<compile_context>
chip_gen: v6e
topology: v6e:2x2x1
jax: 0.10.0
libtpu: 0.0.40
codegen_flags: <defaults>
</compile_context>

<pallas_src>
import math
from functools import partial

import jax
import jax.numpy as jnp
from jax.experimental import pallas as pl
from jax.experimental.pallas import tpu as pltpu

SUBLANE = 8
_MIN_SPLIT_BATCH = 256   # only split into 2 tiles (for v7x dual-TC) above this


def _round_up(x, m):
    return (x + m - 1) // m * m


def dqn_kernel(x_ref, w1_ref, b1_ref, w2_ref, b2_ref, o_ref):
    # Layer 1: x @ W1 + b1, ReLU  (MXU matmul, VPU bias/relu)
    h = jnp.dot(x_ref[...], w1_ref[...], preferred_element_type=jnp.float32)
    h = jnp.maximum(h + b1_ref[...], 0.0)          # b1 is (1, H) -> broadcasts
    # Layer 2: h @ W2 + b2  (N = size_deck, unpadded full-width block)
    y = jnp.dot(h, w2_ref[...], preferred_element_type=jnp.float32)
    o_ref[...] = (y + b2_ref[...]).astype(o_ref.dtype)


def _choose_batch_tile(B, batch_tile):
    """Pick (tile, grid_steps, B_pad): ragged-friendly, >=2 steps for big B."""
    n_tiles = pl.cdiv(B, batch_tile)
    if n_tiles < 2 and B >= _MIN_SPLIT_BATCH:
        n_tiles = 2                       # v7x: shard across both TensorCores
    tb = _round_up(pl.cdiv(B, n_tiles), SUBLANE)
    grid_steps = pl.cdiv(B, tb)
    return tb, grid_steps, grid_steps * tb


@partial(jax.jit, static_argnames=("batch_tile",))
def dqn_forward(x, w1_t, b1, w2_t, b2, *, batch_tile=1024):
    """Fused DQN forward. x: (B, D); w1_t: (D, H); b1: (H,)/(1,H);
    w2_t: (H, D); b2: (D,)/(1,D). Returns (B, D)."""
    B, D = x.shape
    H = w1_t.shape[1]

    b1_r = jnp.reshape(b1, (1, H))
    b2_r = jnp.reshape(b2, (1, D))

    tb, grid_steps, B_pad = _choose_batch_tile(B, batch_tile)

    # Pad only the ragged tail rows (at most tb-1, typically <8); zeros flow
    # through the MLP harmlessly and are sliced off below.
    if B_pad != B:
        x_p = jnp.zeros((B_pad, D), x.dtype).at[:B].set(x)
    else:
        x_p = x

    bytes_accessed = 4 * (B_pad * D          # x read
                          + D * H + H        # W1, b1
                          + H * D + D        # W2, b2
                          + B_pad * D)       # output write
    cost = pl.CostEstimate(flops=2 * B_pad * (D * H + H * D),
                           transcendentals=0,
                           bytes_accessed=bytes_accessed)

    out = pl.pallas_call(
        dqn_kernel,
        out_shape=jax.ShapeDtypeStruct((B_pad, D), x.dtype),
        grid=(grid_steps,),
        in_specs=[
            pl.BlockSpec((tb, D), lambda i: (i, 0)),   # x: tiled over batch
            pl.BlockSpec((D, H), lambda i: (0, 0)),    # W1: VMEM-resident
            pl.BlockSpec((1, H), lambda i: (0, 0)),    # b1
            pl.BlockSpec((H, D), lambda i: (0, 0)),    # W2
            pl.BlockSpec((1, D), lambda i: (0, 0)),    # b2
        ],
        out_specs=pl.BlockSpec((tb, D), lambda i: (i, 0)),
        compiler_params=pltpu.CompilerParams(
            dimension_semantics=("parallel",)),        # batch axis independent
        cost_estimate=cost,
    )(x_p, w1_t, b1_r, w2_t, b2_r)

    return out if B_pad == B else out[:B]


def init_params(key, size_deck, layer_size=128, dtype=jnp.float32):
    """Deterministic init mimicking nn.Linear's U(-1/sqrt(fan_in), 1/sqrt(fan_in))."""
    k1, k2, k3, k4 = jax.random.split(key, 4)
    bound1 = 1.0 / math.sqrt(size_deck)
    bound2 = 1.0 / math.sqrt(layer_size)
    # Stored pre-transposed: (in, out)
    w1_t = jax.random.uniform(k1, (size_deck, layer_size), dtype,
                              minval=-bound1, maxval=bound1)
    b1 = jax.random.uniform(k2, (1, layer_size), dtype,
                            minval=-bound1, maxval=bound1)
    w2_t = jax.random.uniform(k3, (layer_size, size_deck), dtype,
                              minval=-bound2, maxval=bound2)
    b2 = jax.random.uniform(k4, (1, size_deck), dtype,
                            minval=-bound2, maxval=bound2)
    return w1_t, b1, w2_t, b2


def _ref_forward(x, w1_t, b1, w2_t, b2):
    return jnp.maximum(x @ w1_t + jnp.reshape(b1, (1, -1)), 0.0) @ w2_t \
        + jnp.reshape(b2, (1, -1))


if __name__ == "__main__":
    key = jax.random.PRNGKey(0)
    kx, kp, kb, kr = jax.random.split(key, 4)

    size_deck = 32
    layer_size = 128
    w1_t, b1, w2_t, b2 = init_params(kp, size_deck, layer_size)

    # Small single-shot case (matches the module's typical per-state call).
    batch = 2
    x = jax.random.normal(kx, (batch, size_deck), jnp.float32)
    out = jax.block_until_ready(dqn_forward(x, w1_t, b1, w2_t, b2))
    ref = _ref_forward(x, w1_t, b1, w2_t, b2)
    assert out.shape == (batch, size_deck)
    assert jnp.allclose(out, ref, atol=1e-5, rtol=1e-5)

    # Replay-batch case: exercises the multi-step parallel grid (2 tiles of 256).
    big_batch = 512
    xb = jax.random.normal(kb, (big_batch, size_deck), jnp.float32)
    outb = jax.block_until_ready(dqn_forward(xb, w1_t, b1, w2_t, b2))
    refb = _ref_forward(xb, w1_t, b1, w2_t, b2)
    assert outb.shape == (big_batch, size_deck)
    assert jnp.allclose(outb, refb, atol=1e-5, rtol=1e-5)

    # Ragged batch: tile chooser pads by <8 rows instead of a whole tile.
    ragged = 1100
    xr = jax.random.normal(kr, (ragged, size_deck), jnp.float32)
    outr = jax.block_until_ready(dqn_forward(xr, w1_t, b1, w2_t, b2))
    refr = _ref_forward(xr, w1_t, b1, w2_t, b2)
    assert outr.shape == (ragged, size_deck)
    assert jnp.allclose(outr, refr, atol=1e-5, rtol=1e-5)

    print("KERNEL_OK")
</pallas_src>

<mosaic_0001>
module attributes {stable_mosaic.version = 11 : i64} {
  func.func @dqn_kernel(%arg0: i32, %arg1: memref<8x32xf32, #tpu.memory_space<vmem>>, %arg2: memref<32x128xf32, #tpu.memory_space<vmem>>, %arg3: memref<1x128xf32, #tpu.memory_space<vmem>>, %arg4: memref<128x32xf32, #tpu.memory_space<vmem>>, %arg5: memref<1x32xf32, #tpu.memory_space<vmem>>, %arg6: memref<8x32xf32, #tpu.memory_space<vmem>>) attributes {dimension_semantics = [#tpu.dimension_semantics<parallel>], iteration_bounds = array<i64: 1>, scalar_prefetch = 0 : i64, scratch_operands = 0 : i64, tpu.core_type = #tpu.core_type<tc>, window_params = [{transform_indices = @transform_0, window_bounds = array<i64: 8, 32>}, {pipeline_mode = #tpu.pipeline_mode<synchronous>, transform_indices = @transform_1, window_bounds = array<i64: 32, 128>}, {pipeline_mode = #tpu.pipeline_mode<synchronous>, transform_indices = @transform_2, window_bounds = array<i64: 1, 128>}, {pipeline_mode = #tpu.pipeline_mode<synchronous>, transform_indices = @transform_3, window_bounds = array<i64: 128, 32>}, {pipeline_mode = #tpu.pipeline_mode<synchronous>, transform_indices = @transform_4, window_bounds = array<i64: 1, 32>}, {transform_indices = @transform_5, window_bounds = array<i64: 8, 32>}]} {
    %c0 = arith.constant 0 : index
    %c0_0 = arith.constant 0 : index
    %0 = vector.load %arg1[%c0, %c0_0] : memref<8x32xf32, #tpu.memory_space<vmem>>, vector<8x32xf32>
    %c0_1 = arith.constant 0 : index
    %c0_2 = arith.constant 0 : index
    %1 = vector.load %arg2[%c0_1, %c0_2] : memref<32x128xf32, #tpu.memory_space<vmem>>, vector<32x128xf32>
    %cst = arith.constant dense<0.000000e+00> : vector<8x128xf32>
    %2 = tpu.matmul %0, %1, %cst {dimension_numbers = #tpu.dot_dimension_numbers<[1], [0], [0], [1], [0, 0, 1, 1], [], []>} : vector<8x32xf32>, vector<32x128xf32>, vector<8x128xf32> -> vector<8x128xf32>
    %c0_3 = arith.constant 0 : index
    %c0_4 = arith.constant 0 : index
    %3 = vector.load %arg3[%c0_3, %c0_4] : memref<1x128xf32, #tpu.memory_space<vmem>>, vector<1x128xf32>
    %4 = vector.broadcast %3 : vector<1x128xf32> to vector<8x128xf32>
    %5 = arith.addf %2, %4 : vector<8x128xf32>
    %cst_5 = arith.constant 0.000000e+00 : f32
    %6 = vector.broadcast %cst_5 : f32 to vector<8x128xf32>
    %7 = arith.maximumf %5, %6 : vector<8x128xf32>
    %c0_6 = arith.constant 0 : index
    %c0_7 = arith.constant 0 : index
    %8 = vector.load %arg4[%c0_6, %c0_7] : memref<128x32xf32, #tpu.memory_space<vmem>>, vector<128x32xf32>
    %cst_8 = arith.constant dense<0.000000e+00> : vector<8x32xf32>
    %9 = tpu.matmul %7, %8, %cst_8 {dimension_numbers = #tpu.dot_dimension_numbers<[1], [0], [0], [1], [0, 0, 1, 1], [], []>} : vector<8x128xf32>, vector<128x32xf32>, vector<8x32xf32> -> vector<8x32xf32>
    %c0_9 = arith.constant 0 : index
    %c0_10 = arith.constant 0 : index
    %10 = vector.load %arg5[%c0_9, %c0_10] : memref<1x32xf32, #tpu.memory_space<vmem>>, vector<1x32xf32>
    %11 = vector.broadcast %10 : vector<1x32xf32> to vector<8x32xf32>
    %12 = arith.addf %9, %11 : vector<8x32xf32>
    %c0_11 = arith.constant 0 : index
    %c0_12 = arith.constant 0 : index
    %13 = vector.load %arg6[%c0_11, %c0_12] : memref<8x32xf32, #tpu.memory_space<vmem>>, vector<8x32xf32>
    tpu.vector_store %arg6[%c0_11, %c0_12], %12 {strides = array<i32>} : memref<8x32xf32, #tpu.memory_space<vmem>>, vector<8x32xf32>,
    return
  }
  func.func @transform_0(%arg0: i32) -> (i32, i32) {
    %c0_i32 = arith.constant 0 : i32
    %c0_i32_0 = arith.constant 0 : i32
    return %arg0, %c0_i32 : i32, i32
  }
  func.func @transform_1(%arg0: i32) -> (i32, i32) {
    %c0_i32 = arith.constant 0 : i32
    %c0_i32_0 = arith.constant 0 : i32
    %c0_i32_1 = arith.constant 0 : i32
    return %c0_i32, %c0_i32_0 : i32, i32
  }
  func.func @transform_2(%arg0: i32) -> (i32, i32) {
    %c0_i32 = arith.constant 0 : i32
    %c0_i32_0 = arith.constant 0 : i32
    %c0_i32_1 = arith.constant 0 : i32
    return %c0_i32, %c0_i32_0 : i32, i32
  }
  func.func @transform_3(%arg0: i32) -> (i32, i32) {
    %c0_i32 = arith.constant 0 : i32
    %c0_i32_0 = arith.constant 0 : i32
    %c0_i32_1 = arith.constant 0 : i32
    return %c0_i32, %c0_i32_0 : i32, i32
  }
  func.func @transform_4(%arg0: i32) -> (i32, i32) {
    %c0_i32 = arith.constant 0 : i32
    %c0_i32_0 = arith.constant 0 : i32
    %c0_i32_1 = arith.constant 0 : i32
    return %c0_i32, %c0_i32_0 : i32, i32
  }
  func.func @transform_5(%arg0: i32) -> (i32, i32) {
    %c0_i32 = arith.constant 0 : i32
    %c0_i32_0 = arith.constant 0 : i32
    return %arg0, %c0_i32 : i32, i32
  }
}

</mosaic_0001>

<bundles_post_ra>
// kernel: dqn_forward.1
= control target key start
LH: loop header
LB: loop body
LE: loop exit
PB: predicated region body
PF: predicated region fallthrough
CT: control target
= control target key end

     0   :  { %v278_v0 = vmov 0.0   ;;  %vm279_vm0 = vmmov 0   ;;  %vm32_vm1 = vcmask 261120   ;;  %s408_s1 = inlined_call_operand.vmem [shape: f32[32,128], index: 1, kind: input, shape index: {}]   ;;  %s409_s3 = inlined_call_operand.vmem [shape: f32[128,32], index: 3, kind: input, shape index: {}]   ;;  %s410_s0 = inlined_call_operand.vmem [shape: f32[8,32], index: 0, kind: input, shape index: {}]   ;;  %s411_s2 = inlined_call_operand.vmem [shape: f32[1,128], index: 2, kind: input, shape index: {}]   ;;  %s412_s4 = inlined_call_operand.vmem [shape: f32[1,32], index: 4, kind: input, shape index: {}]   ;;  %s413_s5 = inlined_call_operand.vmem [shape: f32[8,32], index: 5, kind: output, shape index: {}]  }
   0x1   :  { %230 = vmatprep.subr.mxu0 %v278_v0  ;;  %v24_v1 = vld [vmem:[%s408_s1 + $0x18] sm:$0xff]  ;;  %v23_v2 = vld [vmem:[%s408_s1 + $0x10] sm:$0xff]  ;;  %238 = vmatprep.mubr.msk.f32.mxu0 %vm279_vm0, %v278_v0  ;;  %v22_v4 = vld [vmem:[%s408_s1 + $0x8] sm:$0xff] }
   0x2   :  { %231 = vmatpush3.msra.mxu0 %v24_v1  ;;  %241 = vmatprep.subr.mxu1 %v278_v0  ;;  %v122_v3 = vld [vmem:[%s409_s3 + $0x78] sm:$0xff]  ;;  %v121_v5 = vld [vmem:[%s409_s3 + $0x70] sm:$0xff]  ;;  %v120_v6 = vld [vmem:[%s409_s3 + $0x68] sm:$0xff] }
   0x3   :  { %232 = vmatprep.subr.mxu0 %v278_v0  ;;  %242 = vmatpush3.msra.mxu1 %v122_v3  ;;  %v21_v7 = vld [vmem:[%s408_s1] sm:$0xff]  ;;  %v118_v10 = vld [vmem:[%s409_s3 + $0x58] sm:$0xff]  ;;  %v117_v11 = vld [vmem:[%s409_s3 + $0x50] sm:$0xff] }
   0x4   :  { %233 = vmatpush3.msra.mxu0 %v23_v2  ;;  %243 = vmatprep.subr.mxu1 %v278_v0  ;;  %v20_v8 = vld [vmem:[%s410_s0] sm:$0xff]  ;;  %v116_v12 = vld [vmem:[%s409_s3 + $0x48] sm:$0xff]  ;;  %v114_v14 = vld [vmem:[%s409_s3 + $0x38] sm:$0xff] }
   0x5   :  { %234 = vmatprep.subr.mxu0 %v278_v0  ;;  %244 = vmatpush3.msra.mxu1 %v121_v5  ;;  %v119_v9 = vld [vmem:[%s409_s3 + $0x60] sm:$0xff]  ;;  %v113_v15 = vld [vmem:[%s409_s3 + $0x30] sm:$0xff]  ;;  %v112_v16 = vld [vmem:[%s409_s3 + $0x28] sm:$0xff] }
   0x6   :  { %235 = vmatpush3.msra.mxu0 %v22_v4  ;;  %245 = vmatprep.subr.mxu1 %v278_v0  ;;  %v115_v13 = vld [vmem:[%s409_s3 + $0x40] sm:$0xff]  ;;  %v110_v18 = vld [vmem:[%s409_s3 + $0x18] sm:$0xff]  ;;  %v109_v19 = vld [vmem:[%s409_s3 + $0x10] sm:$0xff] }
   0x7   :  { %236 = vmatprep.subr.mxu0 %v278_v0  ;;  %246 = vmatpush3.msra.mxu1 %v120_v6  ;;  %v111_v17 = vld [vmem:[%s409_s3 + $0x20] sm:$0xff]  ;;  %v108_v20 = vld [vmem:[%s409_s3 + $0x8] sm:$0xff] }
   0x8   :  { %237 = vmatpush3.msra.mxu0 %v21_v7  ;;  %247 = vmatprep.subr.mxu1 %v278_v0  ;;  %v107_v21 = vld [vmem:[%s409_s3] sm:$0xff] }
   0x9   :  { %239 = vmatmul.mubr.msk.f32.vlgmr.msra.gmra.mxu0 %vm32_vm1, %v20_v8  ;;  %248 = vmatpush3.msra.mxu1 %v119_v9  ;;  %v205_v22 = vld [vmem:[%s411_s2] ss:$0 sm:$0xff] }
   0xa   :  { %249 = vmatprep.subr.mxu1 %v278_v0  ;;  %273 = vmatprep.mubr.msk.f32.mxu1 %vm279_vm0, %v278_v0  ;;  %v207_v27 = vld [vmem:[%s412_s4] ss:$0 sm:$0xff] }
   0xb   :  { %250 = vmatpush3.msra.mxu1 %v118_v10 }
   0xc   :  { %251 = vmatprep.subr.mxu1 %v278_v0 }
   0xd   :  { %252 = vmatpush3.msra.mxu1 %v117_v11 }
   0xe   :  { %253 = vmatprep.subr.mxu1 %v278_v0 }
   0xf   :  { %254 = vmatpush3.msra.mxu1 %v116_v12 }
  0x10   :  { %255 = vmatprep.subr.mxu1 %v278_v0 }
  0x11   :  { %256 = vmatpush3.msra.mxu1 %v115_v13 }
  0x12   :  { %257 = vmatprep.subr.mxu1 %v278_v0 }
  0x13   :  { %258 = vmatpush3.msra.mxu1 %v114_v14 }
  0x14   :  { %259 = vmatprep.subr.mxu1 %v278_v0 }
  0x15   :  { %260 = vmatpush3.msra.mxu1 %v113_v15 }
  0x16   :  { %261 = vmatprep.subr.mxu1 %v278_v0 }
  0x17   :  { %262 = vmatpush3.msra.mxu1 %v112_v16 }
  0x18   :  { %263 = vmatprep.subr.mxu1 %v278_v0 }
  0x19   :  { %264 = vmatpush3.msra.mxu1 %v111_v17 }
  0x1a   :  { %265 = vmatprep.subr.mxu1 %v278_v0 }
  0x1b   :  { %266 = vmatpush3.msra.mxu1 %v110_v18 }
  0x1c   :  { %267 = vmatprep.subr.mxu1 %v278_v0 }
  0x1d   :  { %268 = vmatpush3.msra.mxu1 %v109_v19 }
  0x1e   :  { %269 = vmatprep.subr.mxu1 %v278_v0 }
  0x1f   :  { %270 = vmatpush3.msra.mxu1 %v108_v20 }
  0x20   :  { %271 = vmatprep.subr.mxu1 %v278_v0 }
  0x21   :  { %272 = vmatpush3.msra.mxu1 %v107_v21 }
  0xc9   :  { %v102_v23 = vpop.f32.mrf.mxu0 }
  0xca   :  { %v103_v24 = vadd.f32 %v205_v22, %v102_v23 }
  0xcb   :  { %v240_v25 = vpop.f32.mrf.mxu0 }
  0xcc   :  { %v106_v26 = vmax.f32 %v103_v24, 0.0 }
  0xce   :  { %274 = vmatmul.mubr.f32.vlgmr.msra.gmra.mxu1 %v106_v26 }
 0x18e   :  { %v196_v28 = vpop.f32.mrf.mxu1 }
 0x18f   :  { %v197_v29 = vadd.f32 %v207_v27, %v196_v28 }
 0x190   :  { %v275_v30 = vpop.f32.mrf.mxu1 }
 0x191   :  { %200 = vst.msk [vmem:[%s413_s5] sm:$0xff] %vm32_vm1, %v197_v29 }

</bundles_post_ra>
